<compile_context>
chip_gen: v7x
topology: tpu7x:2x2x1
jax: 0.10.0
libtpu: 0.0.40
codegen_flags: <defaults>
</compile_context>

<pallas_src>
import math

import jax
import jax.numpy as jnp
from jax.experimental import pallas as pl
from jax.experimental.pallas import tpu as pltpu


def make_positional_encoding(d_model: int, max_len: int = 512) -> jnp.ndarray:
    """Sinusoidal PE buffer [1, max_len, d_model], same semantics as the PyTorch __init__
    (even d_model); guarded so odd d_model also works instead of erroring."""
    pos = jnp.arange(0, max_len, dtype=jnp.float32)[:, None]                   # [max_len, 1]
    div_term = jnp.exp(
        jnp.arange(0, d_model, 2, dtype=jnp.float32) * -(math.log(10000.0) / d_model)
    )                                                                           # [ceil(d/2)]
    pe = jnp.zeros((max_len, d_model), dtype=jnp.float32)
    pe = pe.at[:, 0::2].set(jnp.sin(pos * div_term))
    pe = pe.at[:, 1::2].set(jnp.cos(pos * div_term[: d_model // 2]))
    return pe[None, :, :]                                                       # [1, max_len, d_model]


def _pe_add_kernel(x_ref, pe_ref, o_ref):
    # x_ref/o_ref: (B, TS, 128); pe_ref: (1, TS, 128) broadcast over the batch dim.
    o_ref[...] = x_ref[...] + pe_ref[...]


def _sublane_tile(itemsize: int) -> int:
    # Rows per (sublane, lane) tile for the dtype: 8 for f32, 16 for bf16, 32 for int8/fp8.
    return {4: 8, 2: 16, 1: 32}.get(itemsize, 8)


def _default_target_block_bytes() -> int:
    """Per-generation x-block byte target near the HBM roofline knee."""
    try:
        kind = jax.devices()[0].device_kind.lower()
    except Exception:
        return 2 << 20
    if "v5 lite" in kind or "v5lite" in kind or "v5e" in kind:
        return 1 << 20      # v5e: ~0.82 TB/s, knee at ~1 MiB; 16 MiB scoped VMEM default
    if "v7" in kind:
        return 4 << 20      # v7x: ~3.2 TB/s per TC, amortize the ~0.35 us/step cost
    return 2 << 20          # v6e and default


def _pe_add_lane_dense(x3, pe3, *, target_block_bytes=None, alias_input=True):
    """x3: (B, R, 128), pe3: (1, R, 128), same dtype. Returns x3 + pe3 (broadcast over B)."""
    B, R, L = x3.shape
    assert L == 128 and pe3.shape == (1, R, 128) and pe3.dtype == x3.dtype
    itemsize = jnp.dtype(x3.dtype).itemsize
    sub = _sublane_tile(itemsize)
    if target_block_bytes is None:
        target_block_bytes = _default_target_block_bytes()

    full_x_block_bytes = B * R * 128 * itemsize
    if R <= sub or full_x_block_bytes <= target_block_bytes:
        # Single-block fast path: tiny working set, no pipelining needed.
        # Block dims equal the full array dims, so R need not be a multiple of `sub`.
        ts = R
        grid = (1,)
    else:
        rows = target_block_bytes // (B * 128 * itemsize)
        ts = max(sub, (rows // sub) * sub)          # sublane-aligned row count per block
        grid = (pl.cdiv(R, ts),)                    # ragged tail block masked by Pallas

    # Explicit VMEM budget from the *actual* (dense) double-buffered footprint.
    x_block_bytes = B * ts * 128 * itemsize
    pe_block_bytes = ts * 128 * itemsize
    needed = 2 * (2 * x_block_bytes + pe_block_bytes)       # 2x(x + out) + 2x(pe)
    vmem_limit = min(max(int(needed * 1.5) + (1 << 20), 8 << 20), 48 << 20)

    return pl.pallas_call(
        _pe_add_kernel,
        out_shape=jax.ShapeDtypeStruct((B, R, 128), x3.dtype),
        grid_spec=pltpu.PrefetchScalarGridSpec(
            num_scalar_prefetch=0,
            grid=grid,
            in_specs=[
                pl.BlockSpec((B, ts, 128), lambda j: (0, j, 0)),   # x tile (streamed)
                pl.BlockSpec((1, ts, 128), lambda j: (0, j, 0)),   # pe tile (broadcast over B)
            ],
            out_specs=pl.BlockSpec((B, ts, 128), lambda j: (0, j, 0)),
        ),
        compiler_params=pltpu.CompilerParams(
            dimension_semantics=("parallel",),
            vmem_limit_bytes=vmem_limit,
        ),
        # Alias x's lane-dense view to the output.  Only saves HBM if the caller does
        # not keep x alive after the call; otherwise XLA inserts a defensive copy.
        input_output_aliases={0: 0} if alias_input else {},
        cost_estimate=pl.CostEstimate(
            flops=B * R * 128,
            transcendentals=0,
            bytes_accessed=(2 * B + 1) * R * 128 * itemsize,
        ),
    )(x3, pe3)


class PositionalEncoding:
    """Pallas-backed equivalent of the PyTorch PositionalEncoding module."""

    def __init__(self, d_model: int, max_len: int = 512):
        self.d_model = d_model
        self.max_len = max_len
        self.pe = make_positional_encoding(d_model, max_len)   # f32 [1, max_len, d_model]
        self._pe_cache = {}                                     # (seq_len, dtype) -> (1,R,128)

    def _pe_rows(self, seq_len: int, dtype) -> jnp.ndarray:
        """One-time slice/cast/lane-dense layout of the PE buffer (cached per seq_len/dtype)."""
        key = (int(seq_len), jnp.dtype(dtype).name)
        if key not in self._pe_cache:
            n = seq_len * self.d_model
            r = pl.cdiv(n, 128)
            pe2 = self.pe[:, :seq_len, :].astype(dtype).reshape(1, n)
            if r * 128 != n:
                pe2 = jnp.pad(pe2, ((0, 0), (0, r * 128 - n)))
            self._pe_cache[key] = pe2.reshape(1, r, 128)
        return self._pe_cache[key]

    def __call__(self, x: jnp.ndarray, *, target_block_bytes=None, alias_input=True):
        B, S, D = x.shape
        assert D == self.d_model, "feature dim mismatch with d_model"
        assert S <= self.max_len, "sequence length exceeds max_len of the PE buffer"
        n = S * D
        r = pl.cdiv(n, 128)
        pe3 = self._pe_rows(S, x.dtype)

        # Lane-dense view of x: (B, S, D) -> (B, R, 128), padded to full 128-lane rows.
        x2 = x.reshape(B, n)
        if r * 128 != n:
            x2 = jnp.pad(x2, ((0, 0), (0, r * 128 - n)))
        x3 = x2.reshape(B, r, 128)

        out3 = _pe_add_lane_dense(
            x3, pe3, target_block_bytes=target_block_bytes, alias_input=alias_input
        )
        return out3.reshape(B, r * 128)[:, :n].reshape(B, S, D)


if __name__ == "__main__":
    # Small shapes consistent with the module's forward: x of shape [batch, seq, d_model].
    B, S, D = 2, 8, 32
    MAX_LEN = 512

    key = jax.random.PRNGKey(0)
    x = jax.random.normal(key, (B, S, D), dtype=jnp.float32)

    module = PositionalEncoding(D, MAX_LEN)
    out = jax.block_until_ready(module(x))

    ref = x + module.pe[:, :S, :]
    assert out.shape == (B, S, D)
    assert jnp.allclose(out, ref, atol=1e-6, rtol=1e-6), "mismatch vs reference"

    # Also exercise the tiled multi-block path with a ragged N (N = 4800, not a
    # multiple of 128) by forcing a small block target.
    B2, S2, D2 = 3, 100, 48
    x2 = jax.random.normal(jax.random.PRNGKey(1), (B2, S2, D2), dtype=jnp.float32)
    module2 = PositionalEncoding(D2, MAX_LEN)
    out2 = jax.block_until_ready(
        module2(x2, target_block_bytes=8 * 128 * 4 * B2)  # 8-row blocks -> 5 grid steps
    )
    ref2 = x2 + module2.pe[:, :S2, :]
    assert out2.shape == (B2, S2, D2)
    assert jnp.allclose(out2, ref2, atol=1e-6, rtol=1e-6), "mismatch vs reference (tiled)"

    print("KERNEL_OK")
</pallas_src>

<mosaic_0001>
module attributes {stable_mosaic.version = 11 : i64} {
  func.func @_pe_add_kernel(%arg0: i32, %arg1: memref<2x2x128xf32, #tpu.memory_space<vmem>>, %arg2: memref<1x2x128xf32, #tpu.memory_space<vmem>>, %arg3: memref<2x2x128xf32, #tpu.memory_space<vmem>>) attributes {dimension_semantics = [#tpu.dimension_semantics<parallel>], iteration_bounds = array<i64: 1>, scalar_prefetch = 0 : i64, scratch_operands = 0 : i64, tpu.core_type = #tpu.core_type<tc>, window_params = [{transform_indices = @transform_0, window_bounds = array<i64: 2, 2, 128>}, {transform_indices = @transform_1, window_bounds = array<i64: 1, 2, 128>}, {transform_indices = @transform_2, window_bounds = array<i64: 2, 2, 128>}]} {
    %c0 = arith.constant 0 : index
    %c0_0 = arith.constant 0 : index
    %c0_1 = arith.constant 0 : index
    %0 = vector.load %arg1[%c0, %c0_0, %c0_1] : memref<2x2x128xf32, #tpu.memory_space<vmem>>, vector<2x2x128xf32>
    %c0_2 = arith.constant 0 : index
    %c0_3 = arith.constant 0 : index
    %c0_4 = arith.constant 0 : index
    %1 = vector.load %arg2[%c0_2, %c0_3, %c0_4] : memref<1x2x128xf32, #tpu.memory_space<vmem>>, vector<1x2x128xf32>
    %2 = vector.broadcast %1 : vector<1x2x128xf32> to vector<2x2x128xf32>
    %3 = arith.addf %0, %2 : vector<2x2x128xf32>
    %c0_5 = arith.constant 0 : index
    %c0_6 = arith.constant 0 : index
    %c0_7 = arith.constant 0 : index
    %4 = vector.load %arg3[%c0_5, %c0_6, %c0_7] : memref<2x2x128xf32, #tpu.memory_space<vmem>>, vector<2x2x128xf32>
    tpu.vector_store %arg3[%c0_5, %c0_6, %c0_7], %3 {strides = array<i32>} : memref<2x2x128xf32, #tpu.memory_space<vmem>>, vector<2x2x128xf32>,
    return
  }
  func.func @transform_0(%arg0: i32) -> (i32, i32, i32) {
    %c0_i32 = arith.constant 0 : i32
    %c0_i32_0 = arith.constant 0 : i32
    %c0_i32_1 = arith.constant 0 : i32
    return %c0_i32, %arg0, %c0_i32_0 : i32, i32, i32
  }
  func.func @transform_1(%arg0: i32) -> (i32, i32, i32) {
    %c0_i32 = arith.constant 0 : i32
    %c0_i32_0 = arith.constant 0 : i32
    %c0_i32_1 = arith.constant 0 : i32
    return %c0_i32, %arg0, %c0_i32_0 : i32, i32, i32
  }
  func.func @transform_2(%arg0: i32) -> (i32, i32, i32) {
    %c0_i32 = arith.constant 0 : i32
    %c0_i32_0 = arith.constant 0 : i32
    %c0_i32_1 = arith.constant 0 : i32
    return %c0_i32, %arg0, %c0_i32_0 : i32, i32, i32
  }
}

</mosaic_0001>

<bundles_post_ra>
// kernel: tpu_custom_call.1
= control target key start
LH: loop header
LB: loop body
LE: loop exit
PB: predicated region body
PF: predicated region fallthrough
CT: control target
= control target key end

     0   :  { %7 = vsyncpa [#allocation3], 0  ;;  %s154_s0 = inlined_call_operand.hbm [shape: f32[2,2,128], index: 0, kind: input, shape index: {}, may-alias: {0,2}]   ;;  %s155_s1 = inlined_call_operand.vmem [shape: f32[1,2,128], index: 1, kind: input, shape index: {}]   ;;  %s156_s2 = inlined_call_operand.hbm [shape: f32[2,2,128], index: 2, kind: output, shape index: {}, may-alias: {0,2}]  }
   0x1   :  { %8 = vsyncpa [#allocation4], 0  ;;  %s102_s9 = smov [#allocation2]   ;;  %s54_s13 = scalar_lea.hbm %s154_s0, 64 }
   0x2   :  { %s14_s10 = sshll.u32 %s102_s9, 4  ;;  %p55_p0 = scmp.ne.s32.totalorder %s154_s0, %s54_s13  ;;  %s15_s10 = int_to_ptr.vmem [resolvable:$true] %s14_s10 }
   0x3   :  { %p58_p1 = scmp.lt.u32.totalorder %s54_s13, %s154_s0 }
   0x5   :  { %p60_p2 = pnand %p58_p1, %p55_p0 }
   0x7   :  { %63 = shalt.err (!%p60_p2)
}
   0x8   :  { %s64_s18 = scalar_lea.vmem %s15_s10, 64  ;;  %p69_p4 = scmp.lt.s32.totalorder %s15_s10, %s15_s10 }
   0x9   :  { %p65_p3 = scmp.ne.s32.totalorder %s15_s10, %s64_s18  ;;  %p70_p5 = scmp.lt.s32.totalorder %s64_s18, %s64_s18 }
   0xb   :  { %p71_p6 = por %p70_p5, %p69_p4 }
   0xd   :  { %p72_p7 = pnand %p71_p6, %p65_p3 }
   0xf   :  { %75 = shalt.err (!%p72_p7)
}
  0x10   :  { %s103_s19 = smov 32   ;;  %s104_s20 = smov 2  }
  0x11   :  { %20 = dma.hbm_to_vmem [thread:$0]  %s154_s0, 64, %s15_s10, [#allocation3], %s103_s19, %s103_s19, %s104_s20  }
  0x12   :  { %98 = dma.done.wait [#allocation3], 64  }
  0x13   :  { %99 = vsyncadd [#allocation3], 4294967232  ;;  %s105_s23 = smov [#allocation5]   ;;  %v26_v0 = vld [vmem:[#allocation2] sm:$0x3] }
  0x14   :  { %s38_s24 = sshll.u32 %s105_s23, 4  ;;  %v28_v1 = vld [vmem:[%s155_s1] sm:$0x3]  ;;  %v27_v2 = vld [vmem:[#allocation2 + $0x2] sm:$0x3]  ;;  %s39_s24 = int_to_ptr.vmem [resolvable:$true] %s38_s24 }
  0x15   :  { %v29_v3 = vadd.f32 %v28_v1, %v26_v0  ;;  %v30_v4 = vadd.f32 %v28_v1, %v27_v2  ;;  %s76_s27 = scalar_lea.vmem %s39_s24, 64  ;;  %p81_p9 = scmp.lt.s32.totalorder %s39_s24, %s39_s24 }
  0x16   :  { %p77_p8 = scmp.ne.s32.totalorder %s39_s24, %s76_s27  ;;  %p82_p10 = scmp.lt.s32.totalorder %s76_s27, %s76_s27 }
  0x17   :  { %31 = vst [vmem:[#allocation5] sm:$0x3] %v29_v3  ;;  %32 = vst [vmem:[#allocation5 + $0x2] sm:$0x3] %v30_v4 }
  0x18   :  { %p83_p11 = por %p82_p10, %p81_p9 }
  0x1a   :  { %p84_p12 = pnand %p83_p11, %p77_p8 }
  0x1c   :  { %87 = shalt.err (!%p84_p12)
}
  0x1d   :  { %s88_s29 = scalar_lea.hbm %s156_s2, 64 }
  0x1e   :  { %p89_p13 = scmp.ne.s32.totalorder %s156_s2, %s88_s29  ;;  %p92_p0 = scmp.lt.u32.totalorder %s88_s29, %s156_s2 }
  0x20   :  { %p94_p1 = pnand %p92_p0, %p89_p13 }
  0x22   :  { %97 = shalt.err (!%p94_p1)
}
  0x23   :  { %44 = dma.vmem_to_hbm [thread:$0]  %s39_s24, 64, %s156_s2, [#allocation4], %s103_s19, %s103_s19, %s104_s20  }
  0x24   :  { %100 = dma.done.wait [#allocation4], 64  }
  0x25   :  { %101 = vsyncadd [#allocation4], 4294967232 }
  0x26   :  { %48 = vsyncpa [#allocation3], 1 }
  0x27   :  { %49 = vsyncpa [#allocation4], 1 }

</bundles_post_ra>
